<compile_context>
chip_gen: v6e
topology: v6e:2x2x1
jax: 0.10.0
libtpu: 0.0.40
codegen_flags: <defaults>
</compile_context>

<pallas_src>
import jax
import jax.numpy as jnp
from jax import lax
from jax.experimental import pallas as pl
from jax.experimental.pallas import tpu as pltpu


def channel_affine_kernel(x_ref, scale_ref, bias_ref, o_ref):
    # x_ref:     (tile_rows, cols) VMEM tile, lane-dense (cols multiple of 128
    #            or full extent).
    # scale_ref: (tile_rows, 1) f32 column -> broadcasts along lanes.
    # bias_ref:  (tile_rows, 1) f32 column.
    x = x_ref[...].astype(jnp.float32)
    out = x * scale_ref[...] + bias_ref[...]
    o_ref[...] = out.astype(o_ref.dtype)


def _pick_row_tile(rows, cols, bytes_per_elem, target_bytes=4 * 1024 * 1024):
    """Largest row tile (multiple of 8, or full) keeping a buffer <= ~4 MiB."""
    if rows <= 8:
        return rows
    max_rows = max(8, target_bytes // max(1, cols * bytes_per_elem))
    tile = min(rows, max_rows)
    tile = (tile // 8) * 8
    return max(tile, 8)


def _channel_affine_pallas(x, scale, bias):
    """proc(x): per-channel affine, implemented as a tiled Pallas kernel."""
    N, C, H, W = x.shape
    rows, cols = N * C, H * W

    # Lane-dense 2-D view; per-row affine parameters in f32.
    x2 = x.reshape(rows, cols)
    scale_col = jnp.tile(scale.astype(jnp.float32), N).reshape(rows, 1)
    bias_col = jnp.tile(bias.astype(jnp.float32), N).reshape(rows, 1)

    # Budget the tile assuming f32 compute (worst case) per buffer.
    tile_rows = _pick_row_tile(rows, cols, 4)
    grid = (pl.cdiv(rows, tile_rows),)

    out2 = pl.pallas_call(
        channel_affine_kernel,
        out_shape=jax.ShapeDtypeStruct((rows, cols), x.dtype),
        grid_spec=pltpu.PrefetchScalarGridSpec(
            num_scalar_prefetch=0,
            grid=grid,
            in_specs=[
                pl.BlockSpec((tile_rows, cols), lambda i: (i, 0)),  # x
                pl.BlockSpec((tile_rows, 1), lambda i: (i, 0)),     # scale col
                pl.BlockSpec((tile_rows, 1), lambda i: (i, 0)),     # bias col
            ],
            out_specs=pl.BlockSpec((tile_rows, cols), lambda i: (i, 0)),
        ),
        compiler_params=pltpu.CompilerParams(
            dimension_semantics=("parallel",),   # v7x: shard rows over 2 TCs
            vmem_limit_bytes=32 * 1024 * 1024,   # safe on v5e/v6e/v7x
        ),
    )(x2, scale_col, bias_col)

    return out2.reshape(N, C, H, W)


def random_apply(x, scale, bias, key, p):
    """Pallas implementation of RandomApply(proc=channel-affine, p=p).

    PyTorch: `if random.random() > p: return x` i.e. apply proc when u <= p.
    The decision is a single scalar, so it is hoisted to a lax.cond: the
    identity branch costs nothing (no HBM traffic), halving expected HBM
    traffic for this purely memory-bound op at p=0.5.
    """
    u = jax.random.uniform(key, (), dtype=jnp.float32)
    apply_proc = u <= jnp.float32(p)
    return lax.cond(
        apply_proc,
        lambda xx: _channel_affine_pallas(xx, scale, bias),
        lambda xx: xx,
        x,
    )


if __name__ == "__main__":
    key = jax.random.PRNGKey(0)
    k_x, k_apply = jax.random.split(key)

    N, C, H, W = 2, 4, 16, 16
    x = jax.random.normal(k_x, (N, C, H, W), dtype=jnp.float32)

    # Deterministic synthetic parameters for `proc` (per-channel affine).
    scale = 1.0 + 0.1 * jnp.arange(C, dtype=jnp.float32)
    bias = 0.01 * jnp.arange(C, dtype=jnp.float32)
    p = 0.5

    out = jax.jit(lambda xx: random_apply(xx, scale, bias, k_apply, p))(x)
    out = jax.block_until_ready(out)

    # Reference check (pure JAX) for the same sampled decision.
    u = jax.random.uniform(k_apply, (), dtype=jnp.float32)
    ref = jnp.where(u <= p,
                    x * scale.reshape(1, C, 1, 1) + bias.reshape(1, C, 1, 1),
                    x)
    assert out.shape == x.shape and out.dtype == x.dtype
    assert jnp.allclose(out, ref, atol=1e-6), "mismatch vs. reference"

    # Also sanity-check the proc path unconditionally (kernel itself).
    proc_out = jax.block_until_ready(_channel_affine_pallas(x, scale, bias))
    proc_ref = x * scale.reshape(1, C, 1, 1) + bias.reshape(1, C, 1, 1)
    assert jnp.allclose(proc_out, proc_ref, atol=1e-6), "proc kernel mismatch"

    print("KERNEL_OK")
</pallas_src>

<mosaic_0001>
module attributes {stable_mosaic.version = 11 : i64} {
  func.func @channel_affine_kernel(%arg0: i32, %arg1: memref<8x256xf32, #tpu.memory_space<vmem>>, %arg2: memref<8x1xf32, #tpu.memory_space<vmem>>, %arg3: memref<8x1xf32, #tpu.memory_space<vmem>>, %arg4: memref<8x256xf32, #tpu.memory_space<vmem>>) attributes {dimension_semantics = [#tpu.dimension_semantics<parallel>], iteration_bounds = array<i64: 1>, scalar_prefetch = 0 : i64, scratch_operands = 0 : i64, tpu.core_type = #tpu.core_type<tc>, window_params = [{transform_indices = @transform_0, window_bounds = array<i64: 8, 256>}, {transform_indices = @transform_1, window_bounds = array<i64: 8, 1>}, {transform_indices = @transform_2, window_bounds = array<i64: 8, 1>}, {transform_indices = @transform_3, window_bounds = array<i64: 8, 256>}]} {
    %c0 = arith.constant 0 : index
    %c0_0 = arith.constant 0 : index
    %0 = vector.load %arg1[%c0, %c0_0] : memref<8x256xf32, #tpu.memory_space<vmem>>, vector<8x256xf32>
    %c0_1 = arith.constant 0 : index
    %c0_2 = arith.constant 0 : index
    %1 = vector.load %arg2[%c0_1, %c0_2] : memref<8x1xf32, #tpu.memory_space<vmem>>, vector<8x1xf32>
    %2 = vector.broadcast %1 : vector<8x1xf32> to vector<8x256xf32>
    %3 = arith.mulf %0, %2 : vector<8x256xf32>
    %c0_3 = arith.constant 0 : index
    %c0_4 = arith.constant 0 : index
    %4 = vector.load %arg3[%c0_3, %c0_4] : memref<8x1xf32, #tpu.memory_space<vmem>>, vector<8x1xf32>
    %5 = vector.broadcast %4 : vector<8x1xf32> to vector<8x256xf32>
    %6 = arith.addf %3, %5 : vector<8x256xf32>
    %c0_5 = arith.constant 0 : index
    %c0_6 = arith.constant 0 : index
    %7 = vector.load %arg4[%c0_5, %c0_6] : memref<8x256xf32, #tpu.memory_space<vmem>>, vector<8x256xf32>
    tpu.vector_store %arg4[%c0_5, %c0_6], %6 {strides = array<i32>} : memref<8x256xf32, #tpu.memory_space<vmem>>, vector<8x256xf32>,
    return
  }
  func.func @transform_0(%arg0: i32) -> (i32, i32) {
    %c0_i32 = arith.constant 0 : i32
    %c0_i32_0 = arith.constant 0 : i32
    return %arg0, %c0_i32 : i32, i32
  }
  func.func @transform_1(%arg0: i32) -> (i32, i32) {
    %c0_i32 = arith.constant 0 : i32
    %c0_i32_0 = arith.constant 0 : i32
    return %arg0, %c0_i32 : i32, i32
  }
  func.func @transform_2(%arg0: i32) -> (i32, i32) {
    %c0_i32 = arith.constant 0 : i32
    %c0_i32_0 = arith.constant 0 : i32
    return %arg0, %c0_i32 : i32, i32
  }
  func.func @transform_3(%arg0: i32) -> (i32, i32) {
    %c0_i32 = arith.constant 0 : i32
    %c0_i32_0 = arith.constant 0 : i32
    return %arg0, %c0_i32 : i32, i32
  }
}

</mosaic_0001>

<bundles_post_ra>
// kernel: tile.5
= control target key start
LH: loop header
LB: loop body
LE: loop exit
PB: predicated region body
PF: predicated region fallthrough
CT: control target
= control target key end

     0   :  { %s35_s8 = smov 125   ;;  %vm8_vm0 = vcmask 7168   ;;  %s36_s11 = smov 126   ;;  %s62_s0 = inlined_call_operand.vmem [shape: f32[2,4], index: 0, kind: input, shape index: {}]   ;;  %s63_s1 = inlined_call_operand.vmem [shape: f32[8,1], index: 1, kind: output, shape index: {}]  }
   0x1   :  { %v5_v0 = vld [vmem:[%s62_s0] sm:$0x3]  ;;  %s34_s0 = smov 127  }
   0x2   :  { %6 = vst [vmem:[#allocation0] sm:$0x3] %v5_v0 }
   0x9   :  { %v10_v1 = vld [vmem:[#allocation0] sm:$0x3]  }
   0xa   :  { %v22_v2 = vld [vmem:[#allocation0] sm:$0x3]   ;;  %11 = vrot.lane.b32.xlu0 %v10_v1, %s34_s0 }
   0xb   :  { %23 = vrot.lane.b32.xlu1 %v22_v2, %s35_s8  ;;  %v7_v3 = vld [vmem:[#allocation0] sm:$0x3]  }
   0xc   :  { %v16_v4 = vld [vmem:[#allocation0] sm:$0x3]   ;;  %9 = vst.msk [vmem:[%s63_s1] ss:$4 sm:$0x3] %vm8_vm0, %v7_v3  }
   0xe   :  { %17 = vrot.lane.b32.xlu0 %v16_v4, %s36_s11 }
  0x7c   :  { %v12_v5 = vpop.permute.xlu0 %11  }
  0x7d   :  { %v24_v6 = vpop.permute.xlu1 %23   ;;  %28 = vst.msk [vmem:[%s63_s1 + $0x1] ss:$4 sm:$0x3] %vm8_vm0, %v12_v5  }
  0x7e   :  { %30 = vst.msk [vmem:[%s63_s1 + $0x3] ss:$4 sm:$0x3] %vm8_vm0, %v24_v6  }
  0x80   :  { %v18_v7 = vpop.permute.xlu0 %17  }
  0x81   :  { %29 = vst.msk [vmem:[%s63_s1 + $0x2] ss:$4 sm:$0x3] %vm8_vm0, %v18_v7  }

// kernel: tile.2
= control target key start
LH: loop header
LB: loop body
LE: loop exit
PB: predicated region body
PF: predicated region fallthrough
CT: control target
= control target key end

     0   :  { %s22_s0 = inlined_call_operand.vmem [shape: f32[4], index: 0, kind: input, shape index: {}]   ;;  %s23_s1 = inlined_call_operand.vmem [shape: f32[2,4], index: 1, kind: output, shape index: {}]  }
   0x1   :  { %v4_v0 = vld [vmem:[%s22_s0] ss:$0 sm:$0xff] }
   0x2   :  { %5 = vst [vmem:[%s23_s1] sm:$0x3] %v4_v0 }

// kernel: branch_1_fun.2
= control target key start
LH: loop header
LB: loop body
LE: loop exit
PB: predicated region body
PF: predicated region fallthrough
CT: control target
= control target key end

     0   :  { %v40_v0 = vmov 0   ;;  %s79_s1 = inlined_call_operand.vmem [shape: f32[8,1], index: 1, kind: input, shape index: {}]   ;;  %s80_s2 = inlined_call_operand.vmem [shape: f32[8,1], index: 2, kind: input, shape index: {}]   ;;  %s81_s0 = inlined_call_operand.vmem [shape: f32[8,256], index: 0, kind: input, shape index: {}]   ;;  %s82_s3 = inlined_call_operand.vmem [shape: f32[8,256], index: 3, kind: output, shape index: {}]  }
   0x1   :  { %39 = vset.pattern.permute.xlu0 %v40_v0  ;;  %v16_v1 = vld [vmem:[%s79_s1] sm:$0xff]  ;;  %v15_v5 = vld [vmem:[%s81_s0 + $0x8] sm:$0xff] }
   0x2   :  { %19 = vperm.xlu0 %39, %v16_v1   ;;  %v24_v2 = vld [vmem:[%s80_s2] sm:$0xff] }
   0x3   :  { %v14_v4 = vld [vmem:[%s81_s0] sm:$0xff] }
   0x6   :  { %27 = vperm.xlu0 %39, %v24_v2  }
  0x7d   :  { %v20_v3 = vpop.permute.xlu0 %19 }
  0x7e   :  { %v22_v6 = vmul.f32 %v20_v3, %v14_v4  ;;  %v23_v7 = vmul.f32 %v20_v3, %v15_v5 }
  0x81   :  { %v28_v8 = vpop.permute.xlu0 %27 }
  0x82   :  { %v30_v9 = vadd.f32 %v28_v8, %v22_v6  ;;  %v31_v10 = vadd.f32 %v28_v8, %v23_v7 }
  0x84   :  { %32 = vst [vmem:[%s82_s3] sm:$0xff] %v30_v9  ;;  %33 = vst [vmem:[%s82_s3 + $0x8] sm:$0xff] %v31_v10 }

</bundles_post_ra>
